<compile_context>
chip_gen: v7x
topology: tpu7x:2x2x1
jax: 0.10.0
libtpu: 0.0.40
codegen_flags: <defaults>
</compile_context>

<pallas_src>
import math

import jax
import jax.numpy as jnp
from jax.experimental import pallas as pl
from jax.experimental.pallas import tpu as pltpu


def _round_up(x, m):
    return ((x + m - 1) // m) * m


def _linear_kernel(x_ref, w_ref, b_ref, o_ref):
    # x_ref: (TM, r)   w_ref: (r, TN)   b_ref: (1, TN)   o_ref: (TM, TN)
    acc = jnp.dot(x_ref[...], w_ref[...], preferred_element_type=jnp.float32)
    o_ref[...] = (acc + b_ref[...]).astype(o_ref.dtype)


def prepare_film_params(weight, bias, *, compute_dtype=jnp.float32, lane=128):
    """One-time param prep: pre-transpose (and maybe lane-pad) the Linear params.

    weight: (n_3, r) -> w_t:   (r, n3_out)   in compute_dtype (f32 or bf16)
    bias:   (n_3,)   -> b_row: (1, n3_out)   kept in f32 (added to f32 accumulator)

    n_3 is padded to a multiple of 128 only when the remainder is large
    (n_3 % 128 > 64); otherwise padding would amplify output HBM writes more
    than the masked-store cost it saves. Padded columns are zero, so valid
    outputs are unaffected.
    """
    n_3, r = weight.shape
    rem = n_3 % lane
    n3_out = _round_up(n_3, lane) if rem > lane // 2 else n_3

    if n3_out == n_3:
        w_t = weight.T.astype(compute_dtype)
        b_row = bias.astype(jnp.float32).reshape(1, n_3)
    else:
        w_t = (
            jnp.zeros((r, n3_out), dtype=compute_dtype)
            .at[:, :n_3]
            .set(weight.T.astype(compute_dtype))
        )
        b_row = (
            jnp.zeros((1, n3_out), dtype=jnp.float32)
            .at[0, :n_3]
            .set(bias.astype(jnp.float32))
        )
    return w_t, b_row


def netlinear1_forward(ueser, w_t, b_row, n_3, *, force_pallas=False,
                       out_dtype=jnp.float32):
    """ueser: (n_1, n_2, r); w_t: (r, n3_out); b_row: (1, n3_out)."""
    n_1, n_2, r = ueser.shape
    n3_out = w_t.shape[1]
    M = n_1 * n_2
    compute_dtype = w_t.dtype

    # X cast is a single cheap pass (r=10 columns); for bf16 deployments keep
    # ueser stored in bf16 upstream to avoid even this.
    x2d = ueser.reshape(M, r).astype(compute_dtype)

    # Tiny-problem fallback: fixed pallas_call/pipeline setup (~us) dominates;
    # a fused XLA dot is strictly faster there.
    if not force_pallas and M * n3_out < 64 * 1024:
        out2d = jnp.dot(x2d, w_t, preferred_element_type=jnp.float32) + b_row
        out2d = out2d.astype(out_dtype)
        if n3_out != n_3:
            out2d = out2d[:, :n_3]
        return out2d.reshape(n_1, n_2, n_3)

    # ---------------- tile selection (VMEM-budget aware) ----------------
    lane = 128
    in_bytes = jnp.dtype(compute_dtype).itemsize
    out_bytes = jnp.dtype(out_dtype).itemsize

    # N tile: keep all of n_3 in one tile unless it is very wide, then tile it
    # so the double-buffered output tiles fit the budget (helps v5e/v7x).
    TN = n3_out if n3_out <= 2048 else 2048
    tn_pad = _round_up(TN, lane)
    grid_n = pl.cdiv(n3_out, TN)

    # Pick the largest TM whose double-buffered working set stays well under
    # the 32 MiB scoped-VMEM limit (v7x physical VMEM is only 64 MiB total).
    budget = 24 * 1024 * 1024
    r_lane = _round_up(r, lane)          # X tile lane footprint in VMEM
    r_sub = _round_up(r, 8)              # W tile sublane footprint
    cap = (M // 8) * 8 if M >= 8 else M  # never exceed M; keep 8-multiple
    TM = cap
    for cand in (1024, 512, 256, 128, 64, 32, 16, 8):
        tm = min(cand, cap)
        ws = (2 * tm * r_lane * in_bytes        # X tiles (double-buffered)
              + 2 * r_sub * tn_pad * in_bytes   # W tiles
              + 2 * 8 * tn_pad * 4              # bias tiles
              + 2 * tm * tn_pad * out_bytes)    # output tiles (double-buffered)
        if ws <= budget:
            TM = tm
            break

    # Guarantee >= 2 grid steps so both v7x TensorCores get work ("parallel"
    # axes only help with >= 2 iterations); harmless serial loop on v5e/v6e.
    if pl.cdiv(M, TM) * grid_n < 2 and M > 8:
        TM = max(8, _round_up(pl.cdiv(M, 2), 8))
    grid_m = pl.cdiv(M, TM)

    # Note: W^T / bias are tiny here (r=10 rows), so single-buffering them via
    # pipeline_mode=pl.Buffered(1) saves negligible VMEM; left at the default.
    out2d = pl.pallas_call(
        _linear_kernel,
        out_shape=jax.ShapeDtypeStruct((M, n3_out), out_dtype),
        grid=(grid_m, grid_n),
        in_specs=[
            pl.BlockSpec((TM, r), lambda i, j: (i, 0)),   # X tile, pipelined over M
            pl.BlockSpec((r, TN), lambda i, j: (0, j)),   # W^T column tile
            pl.BlockSpec((1, TN), lambda i, j: (0, j)),   # bias row tile
        ],
        out_specs=pl.BlockSpec((TM, TN), lambda i, j: (i, j)),
        compiler_params=pltpu.CompilerParams(
            dimension_semantics=("parallel", "parallel"),
            vmem_limit_bytes=32 * 1024 * 1024,
        ),
    )(x2d, w_t, b_row)

    if n3_out != n_3:
        out2d = out2d[:, :n_3]
    return out2d.reshape(n_1, n_2, n_3)


def init_params(key, n_1, n_2, n_3, r):
    """Deterministic init mirroring the PyTorch module's shapes/init scheme."""
    k_u, k_w, k_b = jax.random.split(key, 3)

    # ueser ~ U(-1/sqrt(n_1), 1/sqrt(n_1))   (reset_parameters)
    stdv = 1.0 / math.sqrt(n_1)
    ueser = jax.random.uniform(
        k_u, (n_1, n_2, r), dtype=jnp.float32, minval=-stdv, maxval=stdv
    )

    # nn.Linear default init: U(-1/sqrt(in_features), 1/sqrt(in_features))
    bound = 1.0 / math.sqrt(r)
    weight = jax.random.uniform(
        k_w, (n_3, r), dtype=jnp.float32, minval=-bound, maxval=bound
    )
    bias = jax.random.uniform(
        k_b, (n_3,), dtype=jnp.float32, minval=-bound, maxval=bound
    )
    return ueser, weight, bias


if __name__ == "__main__":
    key = jax.random.PRNGKey(0)

    # --- Config A: the module's small default-ish shape (n_3 % 128 <= 64 ->
    #     no lane padding). Exercises both the XLA fallback and the forced
    #     Pallas path (2 grid steps via the >=2-step TM shrink).
    n_1, n_2, n_3, r = 4, 8, 32, 10
    ueser, weight, bias = init_params(key, n_1, n_2, n_3, r)
    ref = ueser @ weight.T + bias

    w_t, b_row = prepare_film_params(weight, bias)                 # f32 params
    out_fb = netlinear1_forward(ueser, w_t, b_row, n_3)            # fallback path
    out_pl = netlinear1_forward(ueser, w_t, b_row, n_3, force_pallas=True)
    out_pl = jax.block_until_ready(out_pl)
    assert out_pl.shape == (n_1, n_2, n_3)
    assert jnp.allclose(out_fb, ref, atol=1e-5, rtol=1e-5)
    assert jnp.allclose(out_pl, ref, atol=1e-5, rtol=1e-5)

    # --- Config B: larger M and n_3 % 128 > 64 -> lane-padded output path.
    n_1b, n_2b, n_3b, rb = 8, 64, 96, 10
    ueser_b, weight_b, bias_b = init_params(
        jax.random.fold_in(key, 1), n_1b, n_2b, n_3b, rb
    )
    ref_b = ueser_b @ weight_b.T + bias_b

    w_tb, b_rowb = prepare_film_params(weight_b, bias_b)
    out_b = netlinear1_forward(ueser_b, w_tb, b_rowb, n_3b, force_pallas=True)
    out_b = jax.block_until_ready(out_b)
    assert out_b.shape == (n_1b, n_2b, n_3b)
    assert jnp.allclose(out_b, ref_b, atol=1e-5, rtol=1e-5)

    # --- bf16 fast path (bf16 inputs, f32 MXU accumulation, f32 bias/output);
    #     verified against the f32 reference with a relaxed tolerance.
    w_t16, b_row16 = prepare_film_params(
        weight_b, bias_b, compute_dtype=jnp.bfloat16
    )
    out_b16 = netlinear1_forward(ueser_b, w_t16, b_row16, n_3b, force_pallas=True)
    out_b16 = jax.block_until_ready(out_b16)
    assert jnp.allclose(out_b16, ref_b, atol=5e-2, rtol=5e-2)

    print("KERNEL_OK")
</pallas_src>

<mosaic_0001>
module attributes {stable_mosaic.version = 11 : i64} {
  func.func @_linear_kernel(%arg0: i32, %arg1: i32, %arg2: memref<16x10xf32, #tpu.memory_space<vmem>>, %arg3: memref<10x32xf32, #tpu.memory_space<vmem>>, %arg4: memref<1x32xf32, #tpu.memory_space<vmem>>, %arg5: memref<16x32xf32, #tpu.memory_space<vmem>>) attributes {dimension_semantics = [#tpu.dimension_semantics<parallel>, #tpu.dimension_semantics<parallel>], iteration_bounds = array<i64: 2, 1>, scalar_prefetch = 0 : i64, scratch_operands = 0 : i64, tpu.core_type = #tpu.core_type<tc>, window_params = [{transform_indices = @transform_0, window_bounds = array<i64: 16, 10>}, {transform_indices = @transform_1, window_bounds = array<i64: 10, 32>}, {transform_indices = @transform_2, window_bounds = array<i64: 1, 32>}, {transform_indices = @transform_3, window_bounds = array<i64: 16, 32>}]} {
    %c0 = arith.constant 0 : index
    %c0_0 = arith.constant 0 : index
    %0 = vector.load %arg2[%c0, %c0_0] : memref<16x10xf32, #tpu.memory_space<vmem>>, vector<16x10xf32>
    %c0_1 = arith.constant 0 : index
    %c0_2 = arith.constant 0 : index
    %1 = vector.load %arg3[%c0_1, %c0_2] : memref<10x32xf32, #tpu.memory_space<vmem>>, vector<10x32xf32>
    %cst = arith.constant dense<0.000000e+00> : vector<16x32xf32>
    %2 = tpu.matmul %0, %1, %cst {dimension_numbers = #tpu.dot_dimension_numbers<[1], [0], [0], [1], [0, 0, 1, 1], [], []>} : vector<16x10xf32>, vector<10x32xf32>, vector<16x32xf32> -> vector<16x32xf32>
    %c0_3 = arith.constant 0 : index
    %c0_4 = arith.constant 0 : index
    %3 = vector.load %arg4[%c0_3, %c0_4] : memref<1x32xf32, #tpu.memory_space<vmem>>, vector<1x32xf32>
    %4 = vector.broadcast %3 : vector<1x32xf32> to vector<16x32xf32>
    %5 = arith.addf %2, %4 : vector<16x32xf32>
    %c0_5 = arith.constant 0 : index
    %c0_6 = arith.constant 0 : index
    %6 = vector.load %arg5[%c0_5, %c0_6] : memref<16x32xf32, #tpu.memory_space<vmem>>, vector<16x32xf32>
    tpu.vector_store %arg5[%c0_5, %c0_6], %5 {strides = array<i32>} : memref<16x32xf32, #tpu.memory_space<vmem>>, vector<16x32xf32>,
    return
  }
  func.func @transform_0(%arg0: i32, %arg1: i32) -> (i32, i32) {
    %c0_i32 = arith.constant 0 : i32
    %c0_i32_0 = arith.constant 0 : i32
    return %arg0, %c0_i32 : i32, i32
  }
  func.func @transform_1(%arg0: i32, %arg1: i32) -> (i32, i32) {
    %c0_i32 = arith.constant 0 : i32
    %c0_i32_0 = arith.constant 0 : i32
    return %c0_i32, %arg1 : i32, i32
  }
  func.func @transform_2(%arg0: i32, %arg1: i32) -> (i32, i32) {
    %c0_i32 = arith.constant 0 : i32
    %c0_i32_0 = arith.constant 0 : i32
    return %c0_i32, %arg1 : i32, i32
  }
  func.func @transform_3(%arg0: i32, %arg1: i32) -> (i32, i32) {
    %c0_i32 = arith.constant 0 : i32
    return %arg0, %arg1 : i32, i32
  }
}

</mosaic_0001>

<bundles_post_ra>
// kernel: tpu_custom_call.1
= control target key start
LH: loop header
LB: loop body
LE: loop exit
PB: predicated region body
PF: predicated region fallthrough
CT: control target
= control target key end

     0   :  { %8 = vsyncpa [#allocation3], 0  ;;  %s753_s0 = inlined_call_operand.vmem [shape: f32[32,10], index: 0, kind: input, shape index: {}]   ;;  %s754_s1 = inlined_call_operand.vmem [shape: f32[10,32], index: 1, kind: input, shape index: {}]   ;;  %s755_s2 = inlined_call_operand.vmem [shape: f32[1,32], index: 2, kind: input, shape index: {}]   ;;  %s756_s3 = inlined_call_operand.hbm [shape: f32[32,32], index: 3, kind: output, shape index: {}]  }
   0x1   :  { %10 = vsyncpa [#allocation3 + $0x1], 0  ;;  %s630_s12 = smov 0   ;;  %s632_s13 = smov 0  }
   0x2   :  { %s634_s14 = smov 0   ;;  %s636_s15 = smov 0  }
   0x3   :  { %s638_s16 = smov 0   ;;  %s640_s17 = smov 0  }
   0x4 LB: > { %s431_s18 = sadd.s32 4294967295, %s604_s17   ;;  %s432_s19 = sadd.s32 4294967294, %s604_s17   ;;  %s604_s17 = sphi %s640_s17, %s16_s17   ;;  %s600_s16 = sphi %s638_s16, %s763_s16   ;;  %s596_s15 = sphi %s636_s15, %s762_s15   ;;  %s592_s14 = sphi %s634_s14, %s761_s14   ;;  %s588_s13 = sphi %s632_s13, %s760_s13   ;;  %s584_s12 = sphi %s630_s12, %s759_s12  }
   0x5   : > { %s28_s20 = sadd.s32 1, %s600_s16  ;;  %s115_s21 = sadd.s32 1, %s592_s14 }
   0x6   : > { %p30_p0 = scmp.ge.s32.totalorder %s28_s20, 2  ;;  %p125_p1 = scmp.ne.s32.totalorder %s592_s14, %s588_s13 }
   0x7   : > { %p126_p2 = scmp.eq.s32.totalorder %s431_s18, 1  ;;  %p131_p3 = scmp.ne.s32.totalorder %s588_s13, %s584_s12 }
   0x8   : > { %s765_s20 = smov (%p30_p0, %s28_s20), 0  ;;  %p132_p5 = scmp.eq.s32.totalorder %s432_s19, 1 }
   0x9   : > { %p670_p4 = por %p126_p2, %p125_p1  ;;  %s110_s23 = ssub.s32 %s600_s16, %s765_s20 }
   0xa   : > { %p437_p6 = scmp.ge.s32.totalorder %s604_s17, 1  ;;  %p113_p7 = scmp.eq.s32.totalorder %s110_s23, 0 }
   0xb   : > { %p677_p8 = por %p132_p5, %p131_p3  ;;  %p172_p9 = scmp.lt.s32.totalorder %s604_s17, 3 }
   0xc   : > { %s683_s25 = scalar_select %p113_p7, %s592_s14, %s115_s21  }
   0xd   : > { %p173_p10 = pnand %p437_p6, %p172_p9 }
   0xe   : > { %v219_v0 = vld [vmem:[%s754_s1] sm:$0xff] (!%p173_p10)  ;;  %v220_v1 = vld [vmem:[%s754_s1 + $0x8] sm:$0x3] (!%p173_p10)  ;;  %vm235_vm0 = vcmask (!%p173_p10), 1041408   ;;  %s439_s30 = sshll.u32 (!%p173_p10), %s596_s15, 1  ;;  %vm606_vm1 = vmmov (!%p173_p10), 1  }
   0xf   : > { %176 = sbr.rel (%p173_p10) target bundleno = 257 (0x101), region = 32  ;;  %v462_v2 = vpack.c.bf16 (!%p173_p10), %v220_v1, %v219_v0  ;;  %vm463_vm2 = vmpackc.low (!%p173_p10), %vm235_vm0, %vm606_vm1  ;;  %p204_p11 = scmp.lt.s32.totalorder (!%p173_p10), %s439_s30, 3  ;;  %vm228_vm3 = vcmask (!%p173_p10), 80896   ;;  %v441_v5 = vld [vmem:[%s755_s2] ss:$0 sm:$0xff] (!%p173_p10)  ;;  %vm314_vm4 = vcmask (!%p173_p10), 261120  }
  0x10   : > { %s200_s8 = sand.u32 (!%p173_p10), 1, %s588_s13   ;;  %s450_s21 = sshll.u32 (!%p173_p10), %s596_s15, 8 }
  0x11   : > { %464 = vmatprep.subr.msk.bf16.mxu0 (!%p173_p10), %vm463_vm2, %v462_v2  ;;  %s438_s9 = sshll.u32 (!%p173_p10), %s200_s8, 4  ;;  %s705_s27 = scalar_lea.hbm (!%p173_p10), %s756_s3, %s450_s21 }
  0x12   : > { %467 = vmatpush3.bf16.msk.msra.mxu0 (!%p173_p10), %vm463_vm2, %v462_v2  ;;  %s202_s18 = scalar_lea.vmem (!%p173_p10), [#allocation2], %s438_s9  ;;  %s707_s28 = scalar_lea.sflag (!%p173_p10), [#allocation3], %s200_s8 }
  0x13   : > { %s332_s19 = sshll.u32 (!%p173_p10), %s202_s18, 4  ;;  %s607_s29 = smov (!%p173_p10), [#allocation2]   ;;  %s700_s19 = int_to_ptr.vmem [resolvable:$true] %s332_s19 }
  0x14   : > { %s526_s15 = scalar_lea.vmem (!%p173_p10), %s700_s19, 256 }
  0x15   : > { %p527_p12 = scmp.ne.s32.totalorder (!%p173_p10), %s700_s19, %s526_s15 }
  0x16   : > { %s767_s30 = smov (!%p204_p11, %s439_s30), 3 }
  0x17   : > { %s440_s4 = sshll.u32 %s767_s30, 3  ;;  %p528_p13 = pnand %p527_p12, %p670_p4 }
  0x18   : > { %s207_s7 = scalar_lea.vmem %s753_s0, %s440_s4  ;;  %s530_s30 = sshll.u32 %s607_s29, 4  ;;  %s531_s30 = int_to_ptr.vmem [resolvable:$false] %s530_s30 }
  0x19   : > { %v217_v3 = vld [vmem:[%s207_s7] sm:$0xff]  ;;  %v218_v4 = vld [vmem:[%s207_s7 + $0x8] sm:$0xff]  ;;  %p529_p0 = pneg %p528_p13  ;;  %s532_s4 = scalar_lea.vmem %s531_s30, 512 }
  0x1a   : > { %459 = vmatprep.mubr.msk.f32.mxu0 %vm228_vm3, %v217_v3  ;;  %p533_p1 = scmp.lt.s32.totalorder %s700_s19, %s531_s30  ;;  %p534_p2 = scmp.lt.s32.totalorder %s532_s4, %s526_s15 }
  0x1b   : > { %460 = vmatmul.mubr.msk.f32.vlgmr.msra.gmra.mrb[0].mxu0 %vm228_vm3, %v218_v4 }
  0x1c   : > { %p535_p3 = por %p534_p2, %p533_p1 }
  0x1e   : > { %p536_p5 = pnand %p535_p3, %p529_p0 }
  0xee   : > { %v461_v6 = vpop.f32.mrb[0].mxu0 }
  0xef   : > { %v311_v7 = vadd.f32 %v461_v6, %v441_v5  ;;  %v305_v8 = vpop.f32.mrb[1].mxu0 }
  0xf0   : > { %v306_v9 = vadd.f32 %v441_v5, %v305_v8 }
  0xf1   : > { %316 = vst.msk [vmem:[%s202_s18 + $0x8] sm:$0xff] %vm314_vm4, %v311_v7 }
  0xf2   : > { %315 = vst.msk [vmem:[%s202_s18] sm:$0xff] %vm314_vm4, %v306_v9 }
  0xf3   : > { %539 = shalt.err (!%p536_p5)
}
  0xf4   : > { %s540_s5 = scalar_lea.hbm %s705_s27, 256  ;;  %s544_s8 = scalar_lea.hbm %s756_s3, 512 }
  0xf5   : > { %p541_p6 = scmp.ne.s32.totalorder %s705_s27, %s540_s5  ;;  %p545_p10 = scmp.lt.u32.totalorder %s705_s27, %s756_s3 }
  0xf6   : > { %p546_p11 = scmp.lt.u32.totalorder %s544_s8, %s540_s5  ;;  %p548_p13 = scmp.lt.u32.totalorder %s540_s5, %s705_s27 }
  0xf7   : > { %p542_p7 = pnand %p541_p6, %p670_p4 }
  0xf8   : > { %p547_p12 = por %p546_p11, %p545_p10 }
  0xf9   : > { %p543_p9 = pneg %p542_p7 }
  0xfa   : > { %p549_p0 = por %p548_p13, %p547_p12 }
  0xfc   : > { %p550_p1 = pnand %p549_p0, %p543_p9 }
  0xfe   : > { %553 = shalt.err (!%p550_p1)
}
  0xff   : > { %s608_s11 = smov 128   ;;  %s609_s18 = smov 8  }
 0x100   : > { %468 = dma.vmem_to_hbm [thread:$0]  (%p670_p4), %s700_s19, 256, %s705_s27, %s707_s28, %s608_s11, %s608_s11, %s609_s18  }
 0x101 PF: > { %p474_p2 = scmp.ge.s32.totalorder %s604_s17, 2  ;;  %s347_s21 = sand.u32 1, %s584_s12  }
 0x102   : > { %s348_s23 = scalar_lea.sflag [#allocation3], %s347_s21 }
 0x103   : > { %p471_p3 = pnand %p474_p2, %p677_p8 }
 0x105   : > { %579 = dma.done.wait (!%p471_p3), %s348_s23, 256  }
 0x106   : > { %581 = vsyncadd (!%p471_p3), %s348_s23, 4294967040  ;;  %s16_s17 = sadd.s32 1, %s604_s17   ;;  %s759_s12 = smov %s588_s13 }
 0x107   : > { %p13_p5 = scmp.ge.s32.totalorder %s16_s17, 4   ;;  %s760_s13 = smov %s592_s14 }
 0x108   : > { %s761_s14 = smov %s683_s25  ;;  %s762_s15 = smov %s600_s16 }
 0x109   : > { %s763_s16 = smov %s765_s20  ;;  %15 = sbr.rel (!%p13_p5) target bundleno = 4 (0x4), region = 73 }
 0x110   :  { %353 = vsyncpa [#allocation3], 1 }
 0x111   :  { %355 = vsyncpa [#allocation3 + $0x1], 1 }

</bundles_post_ra>
